<compile_context>
chip_gen: v7x
topology: tpu7x:2x2x1
jax: 0.10.0
libtpu: 0.0.40
codegen_flags: <defaults>
</compile_context>

<pallas_src>
import functools

import jax
import jax.numpy as jnp
from jax import lax
from jax.experimental import pallas as pl
from jax.experimental.pallas import tpu as pltpu


def _round_up(x: int, m: int) -> int:
    return ((x + m - 1) // m) * m


def _nt_xent_lse_kernel(zr_ref, zc_ref, lse_ref, l_sc, *,
                        inv_temp: float, n_valid: int):
    """Per-row logsumexp_{k != row}(cos(row, col_k) / T), streamed over column tiles."""
    i = pl.program_id(0)                       # row tile   (parallel)
    j = pl.program_id(1)                       # col tile   (streamed reduction)
    last_j = pl.num_programs(1) - 1
    t_r = zr_ref.shape[0]
    t_c = zc_ref.shape[0]

    @pl.when(j == 0)
    def _init():
        l_sc[...] = jnp.zeros_like(l_sc)

    # (t_r, t_c) cosine tile on the MXU; operands stay in the input dtype
    # (bf16 stays bf16), accumulation in f32.
    dims = (((1,), (1,)), ((), ()))
    s = lax.dot_general(zr_ref[...], zc_ref[...], dims,
                        preferred_element_type=jnp.float32)

    # Scores are cos/T and bounded by 1/T, so a fixed shift replaces the
    # online running max:  logsumexp_k(cos_k/T) = 1/T + log(sum_k exp((cos_k-1)/T))
    p = jnp.exp((s - 1.0) * inv_temp)          # every term <= ~1, no overflow

    # Row-sum via a skinny MXU matmul (frees the XLU cross-lane reduce).
    ones_col = jnp.ones((t_c, 1), dtype=jnp.float32)
    red_dims = (((1,), (0,)), ((), ()))

    def _accum(prob):
        l_sc[...] = l_sc[...] + lax.dot_general(
            prob, ones_col, red_dims, preferred_element_type=jnp.float32)

    # Self-similarity entries (global row == global col) only exist on i == j
    # tiles; padded columns only on the tile containing the pad boundary.
    # Pay the iota/compare/select only there.
    needs_mask = jnp.logical_or(i == j, (j + 1) * t_c > n_valid)

    @pl.when(needs_mask)
    def _masked():
        r_ids = lax.broadcasted_iota(jnp.int32, (t_r, t_c), 0) + i * t_r
        c_ids = lax.broadcasted_iota(jnp.int32, (t_r, t_c), 1) + j * t_c
        keep = jnp.logical_and(r_ids != c_ids, c_ids < n_valid)
        _accum(jnp.where(keep, p, 0.0))

    @pl.when(jnp.logical_not(needs_mask))
    def _plain():
        _accum(p)

    @pl.when(j == last_j)
    def _finalize():
        lse_ref[...] = jnp.float32(inv_temp) + jnp.log(l_sc[...])


def _vmem_capacity_bytes() -> int:
    try:
        return int(pltpu.get_tpu_info().vmem_capacity_bytes)
    except Exception:
        return 64 * 1024 * 1024            # conservative: v7x per-TensorCore VMEM


def _choose_tile(n: int, d: int, dtype_bytes: int, max_tile: int, budget: int):
    """Pick an 8-aligned square tile t and padded extent n_pad = t * num_tiles."""
    n8 = _round_up(max(n, 8), 8)
    max_tile = max(8, min(max_tile, n8))
    num = -(-n8 // max_tile)               # cdiv
    while True:
        t = _round_up(-(-n8 // num), 8)
        # rows + cols double-buffered (input dtype) + small f32 scratch/output
        est = 4 * t * d * dtype_bytes + 64 * t
        if est <= budget or t <= 8:
            return t, t * num, est
        num *= 2


def simclr_loss(z_i: jax.Array, z_j: jax.Array, temperature: float,
                *, max_tile: int = 256) -> jax.Array:
    assert z_i.ndim == 2 and z_i.shape == z_j.shape
    b, d = z_i.shape
    n = 2 * b
    inv_temp = 1.0 / float(temperature)
    f32 = jnp.float32

    # One O(N*D) pre-pass: concatenate and cosine-normalize (norm computed in
    # f32, result kept in the input dtype so the MXU sees bf16 when inputs are
    # bf16).  Note: torch.nn.CosineSimilarity clamps the *product* of norms at
    # eps=1e-8; clamping each norm is identical for non-degenerate inputs.
    z = jnp.concatenate([z_i, z_j], axis=0)
    zf = z.astype(f32)
    inv_norm = 1.0 / jnp.maximum(
        jnp.sqrt(jnp.sum(zf * zf, axis=-1, keepdims=True)), 1e-8)
    zn = (zf * inv_norm).astype(z.dtype)

    # Positive logits: cos(z_i[r], z_j[r]) / T, shared by rows r and B + r.
    znf = zn.astype(f32)
    pos = jnp.sum(znf[:b] * znf[b:], axis=-1) * jnp.float32(inv_temp)    # (b,)

    vmem_cap = _vmem_capacity_bytes()
    t, n_pad, est = _choose_tile(n, d, zn.dtype.itemsize, max_tile, vmem_cap // 2)
    if n_pad > n:
        zn = jnp.pad(zn, ((0, n_pad - n), (0, 0)))   # zero rows -> masked in-kernel

    grid = (n_pad // t, n_pad // t)
    row_spec = pl.BlockSpec((t, d), lambda i, j: (i, 0))
    col_spec = pl.BlockSpec((t, d), lambda i, j: (j, 0))
    out_spec = pl.BlockSpec((t, 1), lambda i, j: (i, 0))

    kernel = functools.partial(_nt_xent_lse_kernel,
                               inv_temp=inv_temp, n_valid=n)

    vmem_limit = int(min(vmem_cap - vmem_cap // 8,
                         max(32 * 1024 * 1024, 4 * est)))

    lse = pl.pallas_call(
        kernel,
        out_shape=jax.ShapeDtypeStruct((n_pad, 1), f32),
        grid_spec=pltpu.PrefetchScalarGridSpec(
            num_scalar_prefetch=0,
            grid=grid,
            in_specs=[row_spec, col_spec],
            out_specs=out_spec,
            scratch_shapes=[pltpu.VMEM((t, 1), f32)]),
        compiler_params=pltpu.CompilerParams(
            dimension_semantics=("parallel", "arbitrary"),
            vmem_limit_bytes=vmem_limit),
    )(zn, zn)

    # per-row loss = lse_row - pos_row; sum of pos over all N rows = 2*sum(pos)
    return (jnp.sum(lse[:n, 0]) - 2.0 * jnp.sum(pos)) / jnp.float32(n)


def _simclr_loss_ref(z_i, z_j, temperature):
    """Pure-JAX reference mirroring the PyTorch forward pass."""
    bsz = z_i.shape[0]
    n = 2 * bsz
    z = jnp.concatenate([z_i, z_j], axis=0).astype(jnp.float32)
    zn = z / jnp.maximum(jnp.linalg.norm(z, axis=-1, keepdims=True), 1e-8)
    sim = jnp.einsum("nd,md->nm", zn, zn,
                     precision=lax.Precision.HIGHEST) / temperature
    pos = jnp.concatenate([jnp.diag(sim, bsz), jnp.diag(sim, -bsz)], axis=0)
    eye = jnp.eye(n, dtype=bool)
    lse = jax.scipy.special.logsumexp(jnp.where(eye, -jnp.inf, sim), axis=-1)
    return jnp.sum(lse - pos) / n


if __name__ == "__main__":
    key = jax.random.PRNGKey(0)
    k1, k2, k3, k4, k5, k6 = jax.random.split(key, 6)

    # Config 1: small single-tile grid, shapes consistent with the module.
    b1, d1, temp1 = 4, 32, 0.5
    zi1 = jax.random.normal(k1, (b1, d1), dtype=jnp.float32)
    zj1 = jax.random.normal(k2, (b1, d1), dtype=jnp.float32)
    out1 = jax.block_until_ready(simclr_loss(zi1, zj1, temp1))
    ref1 = _simclr_loss_ref(zi1, zj1, temp1)
    assert jnp.allclose(out1, ref1, rtol=2e-5, atol=2e-5), (out1, ref1)

    # Config 2: 4x4 grid (max_tile=8) -> exercises the streamed column
    # accumulation, diagonal-tile masking and the parallel row axis.
    b2, d2, temp2 = 16, 32, 0.2
    zi2 = jax.random.normal(k3, (b2, d2), dtype=jnp.float32)
    zj2 = jax.random.normal(k4, (b2, d2), dtype=jnp.float32)
    out2 = jax.block_until_ready(simclr_loss(zi2, zj2, temp2, max_tile=8))
    ref2 = _simclr_loss_ref(zi2, zj2, temp2)
    assert jnp.allclose(out2, ref2, rtol=2e-5, atol=2e-5), (out2, ref2)

    # Config 3: batch not divisible by the tile -> exercises row/column
    # padding and the pad-boundary mask (N=10 padded to 16, 2x2 grid).
    b3, d3, temp3 = 5, 32, 0.3
    zi3 = jax.random.normal(k5, (b3, d3), dtype=jnp.float32)
    zj3 = jax.random.normal(k6, (b3, d3), dtype=jnp.float32)
    out3 = jax.block_until_ready(simclr_loss(zi3, zj3, temp3, max_tile=8))
    ref3 = _simclr_loss_ref(zi3, zj3, temp3)
    assert jnp.allclose(out3, ref3, rtol=2e-5, atol=2e-5), (out3, ref3)

    print("KERNEL_OK")
</pallas_src>

<mosaic_0001>
module attributes {stable_mosaic.version = 11 : i64} {
  func.func @_nt_xent_lse_kernel(%arg0: i32, %arg1: i32, %arg2: memref<8x32xf32, #tpu.memory_space<vmem>>, %arg3: memref<8x32xf32, #tpu.memory_space<vmem>>, %arg4: memref<8x1xf32, #tpu.memory_space<vmem>>, %arg5: memref<8x1xf32, #tpu.memory_space<vmem>>) attributes {dimension_semantics = [#tpu.dimension_semantics<parallel>, #tpu.dimension_semantics<arbitrary>], iteration_bounds = array<i64: 1, 1>, scalar_prefetch = 0 : i64, scratch_operands = 1 : i64, tpu.core_type = #tpu.core_type<tc>, window_params = [{transform_indices = @transform_0, window_bounds = array<i64: 8, 32>}, {transform_indices = @transform_1, window_bounds = array<i64: 8, 32>}, {transform_indices = @transform_2, window_bounds = array<i64: 8, 1>}]} {
    %c0_i32 = arith.constant 0 : i32
    %0 = arith.cmpi eq, %arg1, %c0_i32 : i32
    %1 = arith.extui %0 : i1 to i32
    %c0_i32_0 = arith.constant 0 : i32
    %2 = arith.cmpi ne, %1, %c0_i32_0 : i32
    scf.if %2 {
      %cst_12 = arith.constant 0.000000e+00 : f32
      %25 = vector.broadcast %cst_12 : f32 to vector<8x1xf32>
      %c0_13 = arith.constant 0 : index
      %c0_14 = arith.constant 0 : index
      %26 = vector.load %arg5[%c0_13, %c0_14] : memref<8x1xf32, #tpu.memory_space<vmem>>, vector<8x1xf32>
      tpu.vector_store %arg5[%c0_13, %c0_14], %25 {strides = array<i32>} : memref<8x1xf32, #tpu.memory_space<vmem>>, vector<8x1xf32>,
    } else {
    }
    %c0 = arith.constant 0 : index
    %c0_1 = arith.constant 0 : index
    %3 = vector.load %arg2[%c0, %c0_1] : memref<8x32xf32, #tpu.memory_space<vmem>>, vector<8x32xf32>
    %c0_2 = arith.constant 0 : index
    %c0_3 = arith.constant 0 : index
    %4 = vector.load %arg3[%c0_2, %c0_3] : memref<8x32xf32, #tpu.memory_space<vmem>>, vector<8x32xf32>
    %cst = arith.constant dense<0.000000e+00> : vector<8x8xf32>
    %5 = tpu.matmul %3, %4, %cst {dimension_numbers = #tpu.dot_dimension_numbers<[1], [1], [0], [0], [0, 0, 1, 0], [], []>} : vector<8x32xf32>, vector<8x32xf32>, vector<8x8xf32> -> vector<8x8xf32>
    %cst_4 = arith.constant 1.000000e+00 : f32
    %6 = vector.broadcast %cst_4 : f32 to vector<8x8xf32>
    %7 = arith.subf %5, %6 : vector<8x8xf32>
    %cst_5 = arith.constant 2.000000e+00 : f32
    %8 = vector.broadcast %cst_5 : f32 to vector<8x8xf32>
    %9 = arith.mulf %7, %8 : vector<8x8xf32>
    %10 = math.exp %9 : vector<8x8xf32>
    %cst_6 = arith.constant 1.000000e+00 : f32
    %11 = vector.broadcast %cst_6 : f32 to vector<8x1xf32>
    %12 = arith.cmpi eq, %arg0, %arg1 : i32
    %c1_i32 = arith.constant 1 : i32
    %13 = arith.addi %arg1, %c1_i32 : i32
    %c8_i32 = arith.constant 8 : i32
    %14 = arith.muli %13, %c8_i32 : i32
    %c8_i32_7 = arith.constant 8 : i32
    %15 = arith.cmpi sgt, %14, %c8_i32_7 : i32
    %16 = arith.ori %12, %15 : i1
    %17 = arith.extui %16 : i1 to i32
    %c0_i32_8 = arith.constant 0 : i32
    %18 = arith.cmpi ne, %17, %c0_i32_8 : i32
    scf.if %18 {
      %25 = tpu.iota {dimensions = array<i32: 0>} : vector<8x8xi32>
      %c8_i32_12 = arith.constant 8 : i32
      %26 = arith.muli %arg0, %c8_i32_12 : i32
      %27 = vector.broadcast %26 : i32 to vector<8x8xi32>
      %28 = arith.addi %25, %27 : vector<8x8xi32>
      %29 = tpu.iota {dimensions = array<i32: 1>} : vector<8x8xi32>
      %c8_i32_13 = arith.constant 8 : i32
      %30 = arith.muli %arg1, %c8_i32_13 : i32
      %31 = vector.broadcast %30 : i32 to vector<8x8xi32>
      %32 = arith.addi %29, %31 : vector<8x8xi32>
      %33 = arith.cmpi ne, %28, %32 : vector<8x8xi32>
      %c8_i32_14 = arith.constant 8 : i32
      %34 = vector.broadcast %c8_i32_14 : i32 to vector<8x8xi32>
      %35 = arith.cmpi slt, %32, %34 : vector<8x8xi32>
      %36 = arith.andi %33, %35 : vector<8x8xi1>
      %cst_15 = arith.constant 0.000000e+00 : f32
      %37 = vector.broadcast %cst_15 : f32 to vector<8x8xf32>
      %38 = arith.select %36, %10, %37 : vector<8x8xi1>, vector<8x8xf32>
      %c0_16 = arith.constant 0 : index
      %c0_17 = arith.constant 0 : index
      %39 = vector.load %arg5[%c0_16, %c0_17] : memref<8x1xf32, #tpu.memory_space<vmem>>, vector<8x1xf32>
      %cst_18 = arith.constant dense<0.000000e+00> : vector<8x1xf32>
      %40 = tpu.matmul %38, %11, %cst_18 {dimension_numbers = #tpu.dot_dimension_numbers<[1], [0], [0], [1], [0, 0, 1, 1], [], []>} : vector<8x8xf32>, vector<8x1xf32>, vector<8x1xf32> -> vector<8x1xf32>
      %41 = arith.addf %39, %40 : vector<8x1xf32>
      %c0_19 = arith.constant 0 : index
      %c0_20 = arith.constant 0 : index
      %42 = vector.load %arg5[%c0_19, %c0_20] : memref<8x1xf32, #tpu.memory_space<vmem>>, vector<8x1xf32>
      tpu.vector_store %arg5[%c0_19, %c0_20], %41 {strides = array<i32>} : memref<8x1xf32, #tpu.memory_space<vmem>>, vector<8x1xf32>,
    } else {
    }
    %true = arith.constant true
    %19 = arith.xori %16, %true : i1
    %20 = arith.extui %19 : i1 to i32
    %c0_i32_9 = arith.constant 0 : i32
    %21 = arith.cmpi ne, %20, %c0_i32_9 : i32
    scf.if %21 {
      %c0_12 = arith.constant 0 : index
      %c0_13 = arith.constant 0 : index
      %25 = vector.load %arg5[%c0_12, %c0_13] : memref<8x1xf32, #tpu.memory_space<vmem>>, vector<8x1xf32>
      %cst_14 = arith.constant dense<0.000000e+00> : vector<8x1xf32>
      %26 = tpu.matmul %10, %11, %cst_14 {dimension_numbers = #tpu.dot_dimension_numbers<[1], [0], [0], [1], [0, 0, 1, 1], [], []>} : vector<8x8xf32>, vector<8x1xf32>, vector<8x1xf32> -> vector<8x1xf32>
      %27 = arith.addf %25, %26 : vector<8x1xf32>
      %c0_15 = arith.constant 0 : index
      %c0_16 = arith.constant 0 : index
      %28 = vector.load %arg5[%c0_15, %c0_16] : memref<8x1xf32, #tpu.memory_space<vmem>>, vector<8x1xf32>
      tpu.vector_store %arg5[%c0_15, %c0_16], %27 {strides = array<i32>} : memref<8x1xf32, #tpu.memory_space<vmem>>, vector<8x1xf32>,
    } else {
    }
    %c0_i32_10 = arith.constant 0 : i32
    %22 = arith.cmpi eq, %arg1, %c0_i32_10 : i32
    %23 = arith.extui %22 : i1 to i32
    %c0_i32_11 = arith.constant 0 : i32
    %24 = arith.cmpi ne, %23, %c0_i32_11 : i32
    scf.if %24 {
      %c0_12 = arith.constant 0 : index
      %c0_13 = arith.constant 0 : index
      %25 = vector.load %arg5[%c0_12, %c0_13] : memref<8x1xf32, #tpu.memory_space<vmem>>, vector<8x1xf32>
      %26 = math.log %25 : vector<8x1xf32>
      %cst_14 = arith.constant 2.000000e+00 : f32
      %27 = vector.broadcast %cst_14 : f32 to vector<8x1xf32>
      %28 = arith.addf %27, %26 : vector<8x1xf32>
      %c0_15 = arith.constant 0 : index
      %c0_16 = arith.constant 0 : index
      %29 = vector.load %arg4[%c0_15, %c0_16] : memref<8x1xf32, #tpu.memory_space<vmem>>, vector<8x1xf32>
      tpu.vector_store %arg4[%c0_15, %c0_16], %28 {strides = array<i32>} : memref<8x1xf32, #tpu.memory_space<vmem>>, vector<8x1xf32>,
    } else {
    }
    return
  }
  func.func @transform_0(%arg0: i32, %arg1: i32) -> (i32, i32) {
    %c0_i32 = arith.constant 0 : i32
    %c0_i32_0 = arith.constant 0 : i32
    return %arg0, %c0_i32 : i32, i32
  }
  func.func @transform_1(%arg0: i32, %arg1: i32) -> (i32, i32) {
    %c0_i32 = arith.constant 0 : i32
    %c0_i32_0 = arith.constant 0 : i32
    return %arg1, %c0_i32 : i32, i32
  }
  func.func @transform_2(%arg0: i32, %arg1: i32) -> (i32, i32) {
    %c0_i32 = arith.constant 0 : i32
    %c0_i32_0 = arith.constant 0 : i32
    return %arg0, %c0_i32 : i32, i32
  }
}

</mosaic_0001>

<bundles_post_ra>
// kernel: tpu_custom_call.1
= control target key start
LH: loop header
LB: loop body
LE: loop exit
PB: predicated region body
PF: predicated region fallthrough
CT: control target
= control target key end

     0   :  { %7 = vsyncpa [#allocation4], 0  ;;  %s446_s0 = inlined_call_operand.hbm [shape: f32[8,32], index: 0, kind: input, shape index: {}]   ;;  %s447_s1 = inlined_call_operand.hbm [shape: f32[8,32], index: 1, kind: input, shape index: {}]   ;;  %s448_s2 = inlined_call_operand.vmem [shape: f32[8,1], index: 2, kind: output, shape index: {}]  }
   0x1   :  { %8 = vsyncpa [#allocation6], 0  ;;  %s396_s9 = smov [#allocation3]   ;;  %s397_s11 = smov [#allocation5]  }
   0x2   :  { %s15_s10 = sshll.u32 %s396_s9, 4  ;;  %s25_s12 = sshll.u32 %s397_s11, 4  ;;  %s16_s10 = int_to_ptr.vmem [resolvable:$true] %s15_s10  ;;  %s26_s12 = int_to_ptr.vmem [resolvable:$true] %s25_s12 }
   0x3   :  { %s348_s15 = scalar_lea.hbm %s446_s0, 128 }
   0x4   :  { %p349_p0 = scmp.ne.s32.totalorder %s446_s0, %s348_s15  ;;  %p352_p1 = scmp.lt.u32.totalorder %s348_s15, %s446_s0 }
   0x6   :  { %p354_p2 = pnand %p352_p1, %p349_p0 }
   0x8   :  { %357 = shalt.err (!%p354_p2)
}
   0x9   :  { %s358_s20 = scalar_lea.vmem %s16_s10, 128  ;;  %p363_p4 = scmp.lt.s32.totalorder %s16_s10, %s16_s10 }
   0xa   :  { %p359_p3 = scmp.ne.s32.totalorder %s16_s10, %s358_s20  ;;  %p364_p5 = scmp.lt.s32.totalorder %s358_s20, %s358_s20 }
   0xc   :  { %p365_p6 = por %p364_p5, %p363_p4 }
   0xe   :  { %p366_p7 = pnand %p365_p6, %p359_p3 }
  0x10   :  { %369 = shalt.err (!%p366_p7)
}
  0x11   :  { %18 = dma.hbm_to_vmem [thread:$0]  %s446_s0, 128, %s16_s10, [#allocation4]  }
  0x12   :  { %s370_s25 = scalar_lea.hbm %s447_s1, 128 }
  0x13   :  { %p371_p8 = scmp.ne.s32.totalorder %s447_s1, %s370_s25  ;;  %p374_p9 = scmp.lt.u32.totalorder %s370_s25, %s447_s1 }
  0x15   :  { %p376_p10 = pnand %p374_p9, %p371_p8 }
  0x17   :  { %379 = shalt.err (!%p376_p10)
}
  0x18   :  { %s380_s30 = scalar_lea.vmem %s26_s12, 128  ;;  %p385_p12 = scmp.lt.s32.totalorder %s26_s12, %s26_s12 }
  0x19   :  { %p381_p11 = scmp.ne.s32.totalorder %s26_s12, %s380_s30  ;;  %p386_p13 = scmp.lt.s32.totalorder %s380_s30, %s380_s30 }
  0x1b   :  { %p387_p0 = por %p386_p13, %p385_p12 }
  0x1d   :  { %p388_p1 = pnand %p387_p0, %p381_p11 }
  0x1f   :  { %391 = shalt.err (!%p388_p1)
}
  0x20   :  { %28 = dma.hbm_to_vmem [thread:$0]  %s447_s1, 128, %s26_s12, [#allocation6]  }
  0x21   :  { %392 = dma.done.wait [#allocation4], 128  }
  0x22   :  { %393 = vsyncadd [#allocation4], 4294967168 }
  0x23   :  { %394 = dma.done.wait [#allocation6], 128  }
  0x24   :  { %395 = vsyncadd [#allocation6], 4294967168  ;;  %vm39_vm0 = vcmask 7168   ;;  %v398_v0 = vmov 0.0   ;;  %vm399_vm1 = vmmov 0   ;;  %vm43_vm2 = vcmask 261120  }
  0x25   :  { %40 = vst.msk [vmem:[#allocation2] sm:$0xff] %vm39_vm0, %v398_v0  ;;  %329 = vmatprep.subr.mxu0 %v398_v0  ;;  %331 = vmatprep.mubr.msk.f32.mxu0 %vm399_vm1, %v398_v0  ;;  %v42_v1 = vld [vmem:[#allocation5] sm:$0xff]  ;;  %v41_v2 = vld [vmem:[#allocation3] sm:$0xff]  ;;  %v400_v3 = vmov 1.0   ;;  %v132_v8 = vlaneseq  ;;  %vm147_vm6 = vcmask 64512  }
  0x26   :  { %334 = vmatprep.subr.mxu1 %v398_v0  ;;  %336 = vmatprep.mubr.msk.f32.mxu1 %vm399_vm1, %v398_v0 }
  0x27   :  { %330 = vmatpush3.xpose.msk.msra.mxu0 %vm43_vm2, %v42_v1  ;;  %335 = vmatpush3.msra.mxu1 %v400_v3  ;;  %v133_v10 = vshrl.u32 %v132_v8, 7  ;;  %v138_v11 = vand.u32 127, %v132_v8 }
  0x29   :  { %vm142_vm3 = vcmp.ne.s32.totalorder %v133_v10, %v138_v11  ;;  %vm143_vm4 = vcmp.lt.s32.totalorder %v138_v11, 8 }
  0x2a   :  { %332 = vmatmul.mubr.msk.f32.vlgmr.msra.gmra.mrb[0].mxu0 %vm43_vm2, %v41_v2  ;;  %vm144_vm5 = vmand %vm142_vm3, %vm143_vm4 }
  0x2c   :  { %v146_v14 = vld [vmem:[#allocation2] sm:$0xff] }
  0xfd   :  { %v116_v4 = vpop.f32.mrb[0].mxu0 }
  0xfe   :  { %v322_v5 = vadd.f32 -1.0, %v116_v4  ;;  %v333_v6 = vpop.f32.mrb[1].mxu0 }
 0x100   :  { %v121_v7 = vmul.f32 2.0, %v322_v5 }
 0x102   :  { %v122_v9 = vmul.f32 1.442695, %v121_v7 }
 0x104   :  { %344 = vpow2.f32 %v122_v9 }
 0x10e   :  { %v345_v12 = vpop.eup %344 }
 0x10f   :  { %v145_v13 = vsel %vm144_vm5, %v345_v12, 0.0 }
 0x110   :  { %337 = vmatmul.mubr.msk.f32.vlgmr.msra.gmra.mrb[0].mxu1 %vm147_vm6, %v145_v13 }
 0x1e3   :  { %v217_v15 = vpop.f32.mrb[0].mxu1 }
 0x1e4   :  { %v221_v16 = vadd.f32 %v217_v15, %v146_v14  ;;  %v338_v17 = vpop.f32.mrb[1].mxu1 }
 0x1e6   :  { %223 = vst.msk [vmem:[#allocation2] sm:$0xff] %vm39_vm0, %v221_v16 }
 0x1ed   :  { %v308_v18 = vld [vmem:[#allocation2] sm:$0xff] }
 0x1ee   :  { %346 = vlog2.f32 %v308_v18 }
 0x1f8   :  { %v347_v19 = vpop.eup %346 }
 0x1f9   :  { %v310_v20 = vmul.f32 0.6931472, %v347_v19 }
 0x1fb   :  { %v311_v21 = vadd.f32 2.0, %v310_v20 }
 0x1fd   :  { %313 = vst.msk [vmem:[%s448_s2] sm:$0xff] %vm39_vm0, %v311_v21 }
 0x1fe   :  { %318 = vsyncpa [#allocation4], 1 }
 0x1ff   :  { %319 = vsyncpa [#allocation6], 1 }

</bundles_post_ra>
